<compile_context>
chip_gen: v5e
topology: v5e:2x2
jax: 0.10.0
libtpu: 0.0.40
codegen_flags: <defaults>
</compile_context>

<pallas_src>
import functools

import jax
import jax.numpy as jnp
from jax.experimental import pallas as pl
from jax.experimental.pallas import tpu as pltpu

# ----------------------------- configuration --------------------------------
FEAT_DIM = 64          # feat_dim (small, consistent with the module semantics)
QUEUE_SIZE = 256       # queue_size
BATCH = 4              # batch size
SCALE = 30.0           # scale
LOSS_TYPE = "softmax"  # default loss_type -> add_margin reduces to clamp(-1, 1)
MARGIN = 0.0


# --------------------------- fused Pallas kernel ------------------------------
def _sst_fused_kernel(idx_ref, pg_ref, qt_ref, out_ref, newqt_ref):
    """Single-launch SST forward.

    idx_ref   : SMEM (1,) int32 -- current queue insertion index (multiple of B).
    pg_ref    : [4B, D] stacked un-normalized features, rows = [p1; p2; g2; g1].
    qt_ref    : [Q, D] prototype queue, transposed layout (rows unit-norm).
    out_ref   : [2B, Q] stacked scaled cosine logits, rows = [out1; out2].
    newqt_ref : [Q, D] updated queue (aliased with qt's HBM buffer).
    """
    B4, D = pg_ref.shape
    B = B4 // 4
    Q = qt_ref.shape[0]
    index = pl.multiple_of(idx_ref[0], B)

    # One vectorized L2-normalize for all four feature batches.
    # F.normalize(eps=1e-12): x / max(||x||, eps) == x * rsqrt(max(ssq, eps^2))
    pg = pg_ref[...].astype(jnp.float32)
    ssq = jnp.sum(pg * pg, axis=-1, keepdims=True)
    pgn = pg * jax.lax.rsqrt(jnp.maximum(ssq, 1e-24))

    pn = pgn[: 2 * B]          # [p1n; p2n]  -> LHS of the single stacked matmul
    g_sel = pgn[2 * B:]        # [g2n; g1n]  -> per-output-block spliced prototypes
    g1n = pgn[3 * B:]          # g1n         -> queue update rows

    qt = qt_ref[...]                                                     # [Q, D]

    dn = (((1,), (1,)), ((), ()))   # contract the minor dim of both operands
    # ONE [2B, D] x [Q, D]^T matmul against the *unmodified* queue.
    cos_full = jax.lax.dot_general(pn, qt, dn,
                                   preferred_element_type=jnp.float32)   # [2B, Q]

    # Tiny patch for the B spliced columns:
    #   rows 0..B-1   (out1 / p1) need  p1n . g2n
    #   rows B..2B-1  (out2 / p2) need  p2n . g1n
    # = block-diagonal of pn @ g_sel^T.
    full8 = jax.lax.dot_general(pn, g_sel, dn,
                                preferred_element_type=jnp.float32)      # [2B, 2B]
    rr = jax.lax.broadcasted_iota(jnp.int32, (2 * B, 2 * B), 0)
    kk = jax.lax.broadcasted_iota(jnp.int32, (2 * B, 2 * B), 1)
    same_block = ((rr < B) & (kk < B)) | ((rr >= B) & (kk >= B))
    masked8 = jnp.where(same_block, full8, 0.0)

    kq_k = jax.lax.broadcasted_iota(jnp.int32, (2 * B, Q), 0)
    kq_q = jax.lax.broadcasted_iota(jnp.int32, (2 * B, Q), 1)
    kmod = jnp.where(kq_k >= B, kq_k - B, kq_k)          # k mod B (B power of 2)
    onehot8 = (kq_q == index + kmod).astype(jnp.float32)                 # [2B, Q]
    placed = jnp.dot(masked8, onehot8,
                     preferred_element_type=jnp.float32)                 # [2B, Q]

    in_splice = (kq_q >= index) & (kq_q < index + B)
    cos = jnp.where(in_splice, placed, cos_full)

    # loss_type == 'softmax' -> add_margin is just the clamp, then scale.
    # TODO(synk): am_softmax / arc_softmax margin scatter not implemented
    # (default config does not use them).
    out_ref[...] = jnp.clip(cos, -1.0, 1.0) * SCALE

    # update_queue: copy queue, then dynamic sublane-splice the normalized g1.
    # TODO(synk): random.random() g1/g2 choice not reproduced; g1 used
    # deterministically (does not affect output1/output2 of this step).
    newqt_ref[...] = qt
    newqt_ref[pl.ds(index, B), :] = g1n


@functools.partial(jax.jit, donate_argnums=(5,))
def sst_device_step(index_arr, p1, g2, p2, g1, queue_t):
    """Device-side portion of forward: one fused pallas_call.

    queue_t is DONATED: its HBM buffer is aliased to the updated queue output.
    """
    B, D = p1.shape
    Q = queue_t.shape[0]
    # Coalesce the four feature batches into one sublane-full [4B, D] input.
    pg = jnp.concatenate([p1, p2, g2, g1], axis=0)
    out, new_queue_t = pl.pallas_call(
        _sst_fused_kernel,
        out_shape=(
            jax.ShapeDtypeStruct((2 * B, Q), jnp.float32),   # [out1; out2]
            jax.ShapeDtypeStruct((Q, D), jnp.float32),       # updated queue
        ),
        in_specs=[
            pl.BlockSpec(memory_space=pltpu.MemorySpace.SMEM),   # index scalar
            pl.BlockSpec((4 * B, D), lambda: (0, 0)),            # stacked feats
            pl.BlockSpec((Q, D), lambda: (0, 0)),                # queue (transposed)
        ],
        out_specs=(
            pl.BlockSpec((2 * B, Q), lambda: (0, 0)),
            pl.BlockSpec((Q, D), lambda: (0, 0)),
        ),
        input_output_aliases={2: 1},   # queue input buffer -> new_queue output
    )(index_arr, pg, queue_t)
    label = index_arr[0] + jnp.arange(B, dtype=jnp.int32)
    return out[:B], out[B:], label, new_queue_t


# ------------------------------ module glue ----------------------------------
def init_queue_t(key, feat_dim, queue_size):
    # torch buffer: uniform(-1,1) columns, L2-normalized along dim 0.
    # Transposed layout: rows of queue_t have unit L2 norm.
    q = jax.random.uniform(key, (queue_size, feat_dim), minval=-1.0, maxval=1.0,
                           dtype=jnp.float32)
    return q / jnp.maximum(jnp.linalg.norm(q, axis=1, keepdims=True), 1e-12)


def sst_prototype_forward(p1, g2, p2, g1, cur_ids, queue_t, index, label_list):
    """Forward pass of SST_Prototype (state passed/returned functionally).

    queue_t is the prototype queue in transposed [Q, D] layout.  It is DONATED
    to the device step (updated in place); do not reuse it after this call.
    """
    B = p1.shape[0]
    Q = queue_t.shape[0]
    # The in-kernel splice does not wrap; safe because the queue size is a
    # multiple of the batch size and index advances by B.
    assert Q % B == 0 and index + B <= Q, "queue_size must be a multiple of batch"

    index_arr = jnp.asarray([index], dtype=jnp.int32)
    out1, out2, label, new_queue_t = sst_device_step(
        index_arr, p1, g2, p2, g1, queue_t)

    # Host-side stateful bookkeeping (off the device critical path): a single
    # transfer of cur_ids instead of per-element .item() syncs.
    cur_ids_host = [int(v) for v in jax.device_get(cur_ids)]
    new_label_list = list(label_list)
    for i in range(B):
        new_label_list[index + i] = cur_ids_host[i]
    new_index = (index + B) % Q
    id_set = {l for l in new_label_list if l != -1}

    return out1, out2, label, id_set, new_queue_t, new_index, new_label_list


# --------------------------------- main --------------------------------------
if __name__ == "__main__":
    key = jax.random.PRNGKey(0)
    k_q, k1, k2, k3, k4, k5, k6, k7, k8 = jax.random.split(key, 9)

    queue_t = init_queue_t(k_q, FEAT_DIM, QUEUE_SIZE)
    index = 0
    label_list = [-1] * QUEUE_SIZE

    # pure-JAX reference (queue in transposed [Q, D] layout)
    def _ref_norm(x):
        return x / jnp.maximum(jnp.linalg.norm(x, axis=1, keepdims=True), 1e-12)

    def _ref_theta(p, g, q_t, idx):
        qm = jax.lax.dynamic_update_slice(q_t, _ref_norm(g), (idx, 0))
        return jnp.clip(_ref_norm(p) @ qm.T, -1.0, 1.0) * SCALE

    # ---- step 1 (index = 0) ----
    p1 = jax.random.normal(k1, (BATCH, FEAT_DIM), dtype=jnp.float32)
    g2 = jax.random.normal(k2, (BATCH, FEAT_DIM), dtype=jnp.float32)
    p2 = jax.random.normal(k3, (BATCH, FEAT_DIM), dtype=jnp.float32)
    g1 = jax.random.normal(k4, (BATCH, FEAT_DIM), dtype=jnp.float32)
    cur_ids = jnp.arange(100, 100 + BATCH, dtype=jnp.int32)

    # References computed BEFORE the step: queue_t is donated by the call.
    ref1_o1 = _ref_theta(p1, g2, queue_t, index)
    ref1_o2 = _ref_theta(p2, g1, queue_t, index)
    ref1_qt = jax.lax.dynamic_update_slice(queue_t, _ref_norm(g1), (index, 0))
    jax.block_until_ready((ref1_o1, ref1_o2, ref1_qt))

    out1, out2, label, id_set, queue_t2, index2, label_list2 = \
        sst_prototype_forward(p1, g2, p2, g1, cur_ids, queue_t, index, label_list)
    jax.block_until_ready((out1, out2, label, queue_t2))

    assert out1.shape == (BATCH, QUEUE_SIZE) and out2.shape == (BATCH, QUEUE_SIZE)
    assert jnp.allclose(out1, ref1_o1, atol=1e-4, rtol=1e-4)
    assert jnp.allclose(out2, ref1_o2, atol=1e-4, rtol=1e-4)
    assert jnp.allclose(queue_t2, ref1_qt, atol=1e-5, rtol=1e-5)
    assert label.tolist() == list(range(index, index + BATCH))
    assert index2 == BATCH and id_set == set(range(100, 100 + BATCH))

    # ---- step 2 (nonzero index) — exercises the dynamic splice offset, no retrace ----
    p1b = jax.random.normal(k5, (BATCH, FEAT_DIM), dtype=jnp.float32)
    g2b = jax.random.normal(k6, (BATCH, FEAT_DIM), dtype=jnp.float32)
    p2b = jax.random.normal(k7, (BATCH, FEAT_DIM), dtype=jnp.float32)
    g1b = jax.random.normal(k8, (BATCH, FEAT_DIM), dtype=jnp.float32)
    cur_ids_b = jnp.arange(200, 200 + BATCH, dtype=jnp.int32)

    ref2_o1 = _ref_theta(p1b, g2b, queue_t2, index2)
    ref2_o2 = _ref_theta(p2b, g1b, queue_t2, index2)
    ref2_qt = jax.lax.dynamic_update_slice(queue_t2, _ref_norm(g1b), (index2, 0))
    jax.block_until_ready((ref2_o1, ref2_o2, ref2_qt))

    out1b, out2b, labelb, id_setb, queue_t3, index3, label_list3 = \
        sst_prototype_forward(p1b, g2b, p2b, g1b, cur_ids_b, queue_t2, index2, label_list2)
    jax.block_until_ready((out1b, out2b, labelb, queue_t3))

    assert jnp.allclose(out1b, ref2_o1, atol=1e-4, rtol=1e-4)
    assert jnp.allclose(out2b, ref2_o2, atol=1e-4, rtol=1e-4)
    assert jnp.allclose(queue_t3, ref2_qt, atol=1e-5, rtol=1e-5)
    assert labelb.tolist() == list(range(index2, index2 + BATCH))
    assert index3 == 2 * BATCH
    assert id_setb == set(range(100, 100 + BATCH)) | set(range(200, 200 + BATCH))

    print("KERNEL_OK")
</pallas_src>

<mosaic_0001>
module attributes {stable_mosaic.version = 11 : i64} {
  func.func @_sst_fused_kernel(%arg0: memref<1xi32, #tpu.memory_space<smem>>, %arg1: memref<16x64xf32, #tpu.memory_space<vmem>>, %arg2: memref<256x64xf32, #tpu.memory_space<vmem>>, %arg3: memref<8x256xf32, #tpu.memory_space<vmem>>, %arg4: memref<256x64xf32, #tpu.memory_space<vmem>>) attributes {dimension_semantics = [], scalar_prefetch = 0 : i64, scratch_operands = 0 : i64, tpu.core_type = #tpu.core_type<tc>} {
    %c0 = arith.constant 0 : index
    %0 = memref.load %arg0[%c0] : memref<1xi32, #tpu.memory_space<smem>>
    %1 = tpu.assume_multiple %0, 4 : i32
    %c0_0 = arith.constant 0 : index
    %c0_1 = arith.constant 0 : index
    %2 = vector.load %arg1[%c0_0, %c0_1] : memref<16x64xf32, #tpu.memory_space<vmem>>, vector<16x64xf32>
    %3 = arith.mulf %2, %2 : vector<16x64xf32>
    %cst = arith.constant dense<0.000000e+00> : vector<16xf32>
    %4 = vector.multi_reduction <add>, %3, %cst [1] : vector<16x64xf32> to vector<16xf32>
    %5 = vector.shape_cast %4 : vector<16xf32> to vector<16x1xf32>
    %cst_2 = arith.constant 1.000000e-24 : f32
    %6 = vector.broadcast %cst_2 : f32 to vector<16x1xf32>
    %7 = arith.maximumf %5, %6 : vector<16x1xf32>
    %8 = math.rsqrt %7 : vector<16x1xf32>
    %9 = vector.broadcast %8 : vector<16x1xf32> to vector<16x64xf32>
    %10 = arith.mulf %2, %9 : vector<16x64xf32>
    %11 = vector.extract_strided_slice %10 {offsets = [0, 0], sizes = [8, 64], strides = [1, 1]} : vector<16x64xf32> to vector<8x64xf32>
    %12 = vector.extract_strided_slice %10 {offsets = [8, 0], sizes = [8, 64], strides = [1, 1]} : vector<16x64xf32> to vector<8x64xf32>
    %13 = vector.extract_strided_slice %10 {offsets = [12, 0], sizes = [4, 64], strides = [1, 1]} : vector<16x64xf32> to vector<4x64xf32>
    %c0_3 = arith.constant 0 : index
    %c0_4 = arith.constant 0 : index
    %14 = vector.load %arg2[%c0_3, %c0_4] : memref<256x64xf32, #tpu.memory_space<vmem>>, vector<256x64xf32>
    %cst_5 = arith.constant dense<0.000000e+00> : vector<8x256xf32>
    %15 = tpu.matmul %11, %14, %cst_5 {dimension_numbers = #tpu.dot_dimension_numbers<[1], [1], [0], [0], [0, 0, 1, 0], [], []>} : vector<8x64xf32>, vector<256x64xf32>, vector<8x256xf32> -> vector<8x256xf32>
    %cst_6 = arith.constant dense<0.000000e+00> : vector<8x8xf32>
    %16 = tpu.matmul %11, %12, %cst_6 {dimension_numbers = #tpu.dot_dimension_numbers<[1], [1], [0], [0], [0, 0, 1, 0], [], []>} : vector<8x64xf32>, vector<8x64xf32>, vector<8x8xf32> -> vector<8x8xf32>
    %17 = tpu.iota {dimensions = array<i32: 0>} : vector<8x8xi32>
    %18 = tpu.iota {dimensions = array<i32: 1>} : vector<8x8xi32>
    %c4_i32 = arith.constant 4 : i32
    %19 = vector.broadcast %c4_i32 : i32 to vector<8x8xi32>
    %20 = arith.cmpi slt, %17, %19 : vector<8x8xi32>
    %c4_i32_7 = arith.constant 4 : i32
    %21 = vector.broadcast %c4_i32_7 : i32 to vector<8x8xi32>
    %22 = arith.cmpi slt, %18, %21 : vector<8x8xi32>
    %23 = arith.andi %20, %22 : vector<8x8xi1>
    %c4_i32_8 = arith.constant 4 : i32
    %24 = vector.broadcast %c4_i32_8 : i32 to vector<8x8xi32>
    %25 = arith.cmpi sge, %17, %24 : vector<8x8xi32>
    %c4_i32_9 = arith.constant 4 : i32
    %26 = vector.broadcast %c4_i32_9 : i32 to vector<8x8xi32>
    %27 = arith.cmpi sge, %18, %26 : vector<8x8xi32>
    %28 = arith.andi %25, %27 : vector<8x8xi1>
    %29 = arith.ori %23, %28 : vector<8x8xi1>
    %cst_10 = arith.constant 0.000000e+00 : f32
    %30 = vector.broadcast %cst_10 : f32 to vector<8x8xf32>
    %31 = arith.select %29, %16, %30 : vector<8x8xi1>, vector<8x8xf32>
    %32 = tpu.iota {dimensions = array<i32: 0>} : vector<8x256xi32>
    %33 = tpu.iota {dimensions = array<i32: 1>} : vector<8x256xi32>
    %c4_i32_11 = arith.constant 4 : i32
    %34 = vector.broadcast %c4_i32_11 : i32 to vector<8x256xi32>
    %35 = arith.cmpi sge, %32, %34 : vector<8x256xi32>
    %c4_i32_12 = arith.constant 4 : i32
    %36 = vector.broadcast %c4_i32_12 : i32 to vector<8x256xi32>
    %37 = arith.subi %32, %36 : vector<8x256xi32>
    %38 = arith.select %35, %37, %32 : vector<8x256xi1>, vector<8x256xi32>
    %39 = vector.broadcast %1 : i32 to vector<8x256xi32>
    %40 = arith.addi %39, %38 : vector<8x256xi32>
    %41 = arith.cmpi eq, %33, %40 : vector<8x256xi32>
    %42 = arith.extui %41 : vector<8x256xi1> to vector<8x256xi32>
    %43 = arith.sitofp %42 : vector<8x256xi32> to vector<8x256xf32>
    %cst_13 = arith.constant dense<0.000000e+00> : vector<8x256xf32>
    %44 = tpu.matmul %31, %43, %cst_13 {dimension_numbers = #tpu.dot_dimension_numbers<[1], [0], [0], [1], [0, 0, 1, 1], [], []>} : vector<8x8xf32>, vector<8x256xf32>, vector<8x256xf32> -> vector<8x256xf32>
    %45 = vector.broadcast %1 : i32 to vector<8x256xi32>
    %46 = arith.cmpi sge, %33, %45 : vector<8x256xi32>
    %c4_i32_14 = arith.constant 4 : i32
    %47 = arith.addi %1, %c4_i32_14 : i32
    %48 = vector.broadcast %47 : i32 to vector<8x256xi32>
    %49 = arith.cmpi slt, %33, %48 : vector<8x256xi32>
    %50 = arith.andi %46, %49 : vector<8x256xi1>
    %51 = arith.select %50, %44, %15 : vector<8x256xi1>, vector<8x256xf32>
    %cst_15 = arith.constant -1.000000e+00 : f32
    %cst_16 = arith.constant 1.000000e+00 : f32
    %52 = vector.broadcast %cst_15 : f32 to vector<8x256xf32>
    %53 = arith.maximumf %52, %51 : vector<8x256xf32>
    %54 = vector.broadcast %cst_16 : f32 to vector<8x256xf32>
    %55 = arith.minimumf %54, %53 : vector<8x256xf32>
    %cst_17 = arith.constant 3.000000e+01 : f32
    %56 = vector.broadcast %cst_17 : f32 to vector<8x256xf32>
    %57 = arith.mulf %55, %56 : vector<8x256xf32>
    %c0_18 = arith.constant 0 : index
    %c0_19 = arith.constant 0 : index
    %58 = vector.load %arg3[%c0_18, %c0_19] : memref<8x256xf32, #tpu.memory_space<vmem>>, vector<8x256xf32>
    tpu.vector_store %arg3[%c0_18, %c0_19], %57 {strides = array<i32>} : memref<8x256xf32, #tpu.memory_space<vmem>>, vector<8x256xf32>,
    %c0_20 = arith.constant 0 : index
    %c0_21 = arith.constant 0 : index
    %59 = vector.load %arg4[%c0_20, %c0_21] : memref<256x64xf32, #tpu.memory_space<vmem>>, vector<256x64xf32>
    tpu.vector_store %arg4[%c0_20, %c0_21], %14 {strides = array<i32>} : memref<256x64xf32, #tpu.memory_space<vmem>>, vector<256x64xf32>,
    %60 = arith.index_cast %1 : i32 to index
    %c0_22 = arith.constant 0 : index
    %61 = vector.load %arg4[%60, %c0_22] : memref<256x64xf32, #tpu.memory_space<vmem>>, vector<4x64xf32>
    tpu.vector_store %arg4[%60, %c0_22], %13 {strides = array<i32>} : memref<256x64xf32, #tpu.memory_space<vmem>>, vector<4x64xf32>,
    return
  }
}

</mosaic_0001>

<bundles_post_ra>
// kernel: sst_device_step.1
= control target key start
LH: loop header
LB: loop body
LE: loop exit
PB: predicated region body
PF: predicated region fallthrough
CT: control target
= control target key end

     0   :  { %vm22_vm0 = vcmask 523264   ;;  %vm365_vm4 = vcmask 523268   ;;  %v247_v58 = vlaneseq  ;;  %s750_s1 = inlined_call_operand.vmem [shape: f32[16,64], index: 1, kind: input, shape index: {}]   ;;  %s751_s2 = inlined_call_operand.vmem [shape: f32[256,64], index: 2, kind: input, shape index: {}, may-alias: {2,4}]   ;;  %s752_s4 = inlined_call_operand.vmem [shape: f32[256,64], index: 4, kind: output, shape index: {1}, may-alias: {2,4}]   ;;  %s753_s0 = inlined_call_operand.<no memory space> [shape: s32[1], index: 0, kind: input, shape index: {}]   ;;  %s754_s3 = inlined_call_operand.vmem [shape: f32[8,256], index: 3, kind: output, shape index: {0}]  }
   0x1   :  { %v455_v0 = vld [vmem:[%s750_s1 + $0x8] sm:$0xff]  ;;  %v68_v1 = vld [vmem:[%s751_s2 + $0x78] sm:$0xff]  ;;  %v473_v4 = vld [vmem:[%s750_s1] sm:$0xff]  ;;  %s364_s15 = scalar_lea.vmem %s752_s4, %s753_s0  ;;  %v262_v62 = vstv %s753_s0  ;;  %s316_s19 = sadd.s32 4, %s753_s0 }
   0x2   :  { %v21_v2 = vmul.f32 %v455_v0, %v455_v0  ;;  %376 = vmatpush.xpose.msk.msra.mxu0 %vm22_vm0, %v68_v1  ;;  %347 = vst.msk [vmem:[%s752_s4 + $0x78] sm:$0xff] %vm22_vm0, %v68_v1  ;;  %v20_v9 = vmul.f32 %v473_v4, %v473_v4  ;;  %v248_v59 = vshrl.u32 %v247_v58, 7  ;;  %v250_v63 = vand.u32 127, %v247_v58 }
   0x3   :  { %v426_v1 = vmov 1.0  }
   0x4   :  { %v26_v6 = vsel %vm22_vm0, %v21_v2, 0.0  ;;  %v23_v14 = vsel %vm22_vm0, %v20_v9, 0.0  ;;  %v412_v60 = vadd.s32 4294967292, %v248_v59  ;;  %vm254_vm8 = vcmp.ge.s32.totalorder %v248_v59, 4 }
   0x5   :  { %27 = vadd.xlane.f32.xlu0 %v26_v6  ;;  %v259_v2 = vadd.s32 128, %v250_v63  ;;  %vm251_vm11 = vcmp.lt.s32.totalorder %v248_v59, 4  ;;  %vm252_vm12 = vcmp.lt.s32.totalorder %v250_v63, 4  ;;  %vm255_vm13 = vcmp.ge.s32.totalorder %v250_v63, 4 }
   0x6   :  { %v261_v61 = vsel %vm254_vm8, %v412_v60, %v248_v59  ;;  %vm253_vm14 = vmand %vm251_vm11, %vm252_vm12 }
   0x7   :  { %vm256_vm15 = vmand %vm254_vm8, %vm255_vm13 }
   0x9   :  { %v84_v3 = vld [vmem:[%s751_s2 + $0xf8] sm:$0xff] }
   0xa   :  { %393 = vmatpush.xpose.msk.msra.mxu1 %vm22_vm0, %v84_v3  ;;  %363 = vst.msk [vmem:[%s752_s4 + $0xf8] sm:$0xff] %vm22_vm0, %v84_v3 }
   0xd   :  { %24 = vadd.xlane.f32.xlu0 %v23_v14 }
  0x11   :  { %v67_v5 = vld [vmem:[%s751_s2 + $0x70] sm:$0xff] }
  0x12   :  { %346 = vst.msk [vmem:[%s752_s4 + $0x70] sm:$0xff] %vm22_vm0, %v67_v5  ;;  %377 = vmatpush.xpose.msk.msra.mxu0 %vm22_vm0, %v67_v5  ;;  %v317_v5 = vstv %s316_s19 }
  0x19   :  { %v83_v7 = vld [vmem:[%s751_s2 + $0xf0] sm:$0xff] }
  0x1a   :  { %362 = vst.msk [vmem:[%s752_s4 + $0xf0] sm:$0xff] %vm22_vm0, %v83_v7  ;;  %394 = vmatpush.xpose.msk.msra.mxu1 %vm22_vm0, %v83_v7 }
  0x21   :  { %v66_v8 = vld [vmem:[%s751_s2 + $0x68] sm:$0xff] }
  0x22   :  { %345 = vst.msk [vmem:[%s752_s4 + $0x68] sm:$0xff] %vm22_vm0, %v66_v8  ;;  %378 = vmatpush.xpose.msk.msra.mxu0 %vm22_vm0, %v66_v8 }
  0x29   :  { %v82_v10 = vld [vmem:[%s751_s2 + $0xe8] sm:$0xff] }
  0x2a   :  { %361 = vst.msk [vmem:[%s752_s4 + $0xe8] sm:$0xff] %vm22_vm0, %v82_v10  ;;  %395 = vmatpush.xpose.msk.msra.mxu1 %vm22_vm0, %v82_v10 }
  0x31   :  { %v65_v11 = vld [vmem:[%s751_s2 + $0x60] sm:$0xff] }
  0x32   :  { %344 = vst.msk [vmem:[%s752_s4 + $0x60] sm:$0xff] %vm22_vm0, %v65_v11  ;;  %379 = vmatpush.xpose.msk.msra.mxu0 %vm22_vm0, %v65_v11 }
  0x39   :  { %v81_v12 = vld [vmem:[%s751_s2 + $0xe0] sm:$0xff] }
  0x3a   :  { %360 = vst.msk [vmem:[%s752_s4 + $0xe0] sm:$0xff] %vm22_vm0, %v81_v12  ;;  %396 = vmatpush.xpose.msk.msra.mxu1 %vm22_vm0, %v81_v12 }
  0x41   :  { %v64_v13 = vld [vmem:[%s751_s2 + $0x58] sm:$0xff] }
  0x42   :  { %343 = vst.msk [vmem:[%s752_s4 + $0x58] sm:$0xff] %vm22_vm0, %v64_v13  ;;  %380 = vmatpush.xpose.msk.msra.mxu0 %vm22_vm0, %v64_v13 }
  0x49   :  { %v80_v15 = vld [vmem:[%s751_s2 + $0xd8] sm:$0xff] }
  0x4a   :  { %359 = vst.msk [vmem:[%s752_s4 + $0xd8] sm:$0xff] %vm22_vm0, %v80_v15  ;;  %397 = vmatpush.xpose.msk.msra.mxu1 %vm22_vm0, %v80_v15 }
  0x51   :  { %v63_v16 = vld [vmem:[%s751_s2 + $0x50] sm:$0xff] }
  0x52   :  { %342 = vst.msk [vmem:[%s752_s4 + $0x50] sm:$0xff] %vm22_vm0, %v63_v16  ;;  %381 = vmatpush.xpose.msk.msra.mxu0 %vm22_vm0, %v63_v16 }
  0x59   :  { %v79_v17 = vld [vmem:[%s751_s2 + $0xd0] sm:$0xff] }
  0x5a   :  { %358 = vst.msk [vmem:[%s752_s4 + $0xd0] sm:$0xff] %vm22_vm0, %v79_v17  ;;  %398 = vmatpush.xpose.msk.msra.mxu1 %vm22_vm0, %v79_v17 }
  0x61   :  { %v62_v18 = vld [vmem:[%s751_s2 + $0x48] sm:$0xff] }
  0x62   :  { %341 = vst.msk [vmem:[%s752_s4 + $0x48] sm:$0xff] %vm22_vm0, %v62_v18  ;;  %382 = vmatpush.xpose.msk.msra.mxu0 %vm22_vm0, %v62_v18 }
  0x69   :  { %v78_v19 = vld [vmem:[%s751_s2 + $0xc8] sm:$0xff] }
  0x6a   :  { %357 = vst.msk [vmem:[%s752_s4 + $0xc8] sm:$0xff] %vm22_vm0, %v78_v19  ;;  %399 = vmatpush.xpose.msk.msra.mxu1 %vm22_vm0, %v78_v19 }
  0x71   :  { %v61_v20 = vld [vmem:[%s751_s2 + $0x40] sm:$0xff] }
  0x72   :  { %340 = vst.msk [vmem:[%s752_s4 + $0x40] sm:$0xff] %vm22_vm0, %v61_v20  ;;  %383 = vmatpush.xpose.msk.msra.mxu0 %vm22_vm0, %v61_v20 }
  0x78   :  { %v28_v38 = vpop.xlane.xlu0 %27 }
  0x79   :  { %v77_v21 = vld [vmem:[%s751_s2 + $0xc0] sm:$0xff]  ;;  %v30_v39 = vmax.f32 %v28_v38, 1e-24 }
  0x7a   :  { %356 = vst.msk [vmem:[%s752_s4 + $0xc0] sm:$0xff] %vm22_vm0, %v77_v21  ;;  %400 = vmatpush.xpose.msk.msra.mxu1 %vm22_vm0, %v77_v21 }
  0x7b   :  { %422 = vrsqrt.f32 %v30_v39  ;;  %vm47_vm2 = vweird.f32 %v30_v39 }
  0x80   :  { %v25_v40 = vpop.xlane.xlu0 %24 }
  0x81   :  { %v60_v22 = vld [vmem:[%s751_s2 + $0x38] sm:$0xff]  ;;  %v423_v41 = vpop.eup %422  ;;  %v29_v42 = vmax.f32 %v25_v40, 1e-24 }
  0x82   :  { %339 = vst.msk [vmem:[%s752_s4 + $0x38] sm:$0xff] %vm22_vm0, %v60_v22  ;;  %384 = vmatpush.xpose.msk.msra.mxu0 %vm22_vm0, %v60_v22  ;;  %v42_v43 = vmul.f32 %v423_v41, %v30_v39  ;;  %vm48_vm1 = vweird.f32 %v423_v41 }
  0x83   :  { %424 = vrsqrt.f32 %v29_v42  ;;  %vm49_vm3 = vmor %vm47_vm2, %vm48_vm1  ;;  %vm37_vm6 = vweird.f32 %v29_v42  ;;  %vm270_vm1 = vcmask 64512   ;;  %vm314_vm2 = vcmp.ge.s32.totalorder %v250_v63, %v262_v62 }
  0x84   :  { %v43_v44 = vmul.f32 %v423_v41, %v42_v43 }
  0x86   :  { %v44_v45 = vmul.f32 0.5, %v43_v44 }
  0x88   :  { %v45_v46 = vsub.f32 1.5, %v44_v45 }
  0x89   :  { %v76_v23 = vld [vmem:[%s751_s2 + $0xb8] sm:$0xff]  ;;  %v425_v47 = vpop.eup %424 }
  0x8a   :  { %355 = vst.msk [vmem:[%s752_s4 + $0xb8] sm:$0xff] %vm22_vm0, %v76_v23  ;;  %401 = vmatpush.xpose.msk.msra.mxu1 %vm22_vm0, %v76_v23  ;;  %v32_v48 = vmul.f32 %v425_v47, %v29_v42  ;;  %v46_v49 = vmul.f32 %v423_v41, %v45_v46  ;;  %vm38_vm5 = vweird.f32 %v425_v47 }
  0x8b   :  { %vm39_vm7 = vmor %vm37_vm6, %vm38_vm5  ;;  %vm315_vm5 = vcmp.ge.s32.totalorder %v259_v2, %v262_v62  ;;  %vm319_vm6 = vcmp.lt.s32.totalorder %v259_v2, %v317_v5 }
  0x8c   :  { %v33_v50 = vmul.f32 %v425_v47, %v32_v48  ;;  %v50_v51 = vsel %vm49_vm3, %v423_v41, %v46_v49  ;;  %vm318_vm3 = vcmp.lt.s32.totalorder %v250_v63, %v317_v5 }
  0x8d   :  { %v52_v52 = vmul.f32 %v50_v51, %v455_v0  ;;  %v263_v0 = vadd.s32 %v262_v62, %v261_v61 }
  0x8e   :  { %v34_v53 = vmul.f32 0.5, %v33_v50 }
  0x8f   :  { %410 = vmatpush.xpose.msk.msra.mxu2 %vm22_vm0, %v52_v52  ;;  %vm264_vm9 = vcmp.eq.s32.totalorder %v250_v63, %v263_v0  ;;  %vm265_vm10 = vcmp.eq.s32.totalorder %v259_v2, %v263_v0 }
  0x90   :  { %v35_v54 = vsub.f32 1.5, %v34_v53  ;;  %415 = vmatpush.msk.msra.mxu3 %vm264_vm9, %v426_v1 }
  0x91   :  { %v59_v24 = vld [vmem:[%s751_s2 + $0x30] sm:$0xff] }
  0x92   :  { %v75_v25 = vld [vmem:[%s751_s2 + $0xb0] sm:$0xff]  ;;  %385 = vmatpush.xpose.msk.msra.mxu0 %vm22_vm0, %v59_v24  ;;  %v36_v55 = vmul.f32 %v425_v47, %v35_v54  ;;  %417 = vmatpush.msk.msrb.mxu3 %vm265_vm10, %v426_v1 }
  0x93   :  { %338 = vst.msk [vmem:[%s752_s4 + $0x30] sm:$0xff] %vm22_vm0, %v59_v24  ;;  %402 = vmatpush.xpose.msk.msra.mxu1 %vm22_vm0, %v75_v25 }
  0x94   :  { %354 = vst.msk [vmem:[%s752_s4 + $0xb0] sm:$0xff] %vm22_vm0, %v75_v25  ;;  %v40_v56 = vsel %vm39_vm7, %v425_v47, %v36_v55  ;;  %vm321_vm7 = vmand %vm315_vm5, %vm319_vm6 }
  0x95   :  { %v51_v57 = vmul.f32 %v40_v56, %v473_v4 }
  0x97   :  { %411 = vmatmul.msk.f32.vlgmr.msra.gmra.mxu2 %vm22_vm0, %v51_v57 }
  0x9b   :  { %v58_v26 = vld [vmem:[%s751_s2 + $0x28] sm:$0xff] }
  0x9c   :  { %v74_v27 = vld [vmem:[%s751_s2 + $0xa8] sm:$0xff]  ;;  %386 = vmatpush.xpose.msk.msra.mxu0 %vm22_vm0, %v58_v26 }
  0x9d   :  { %337 = vst.msk [vmem:[%s752_s4 + $0x28] sm:$0xff] %vm22_vm0, %v58_v26  ;;  %403 = vmatpush.xpose.msk.msra.mxu1 %vm22_vm0, %v74_v27 }
  0x9e   :  { %353 = vst.msk [vmem:[%s752_s4 + $0xa8] sm:$0xff] %vm22_vm0, %v74_v27 }
  0xa5   :  { %v57_v28 = vld [vmem:[%s751_s2 + $0x20] sm:$0xff] }
  0xa6   :  { %v73_v29 = vld [vmem:[%s751_s2 + $0xa0] sm:$0xff]  ;;  %387 = vmatpush.xpose.msk.msra.mxu0 %vm22_vm0, %v57_v28 }
  0xa7   :  { %336 = vst.msk [vmem:[%s752_s4 + $0x20] sm:$0xff] %vm22_vm0, %v57_v28  ;;  %404 = vmatpush.xpose.msk.msra.mxu1 %vm22_vm0, %v73_v29 }
  0xa8   :  { %352 = vst.msk [vmem:[%s752_s4 + $0xa0] sm:$0xff] %vm22_vm0, %v73_v29 }
  0xaf   :  { %v56_v30 = vld [vmem:[%s751_s2 + $0x18] sm:$0xff] }
  0xb0   :  { %v72_v31 = vld [vmem:[%s751_s2 + $0x98] sm:$0xff]  ;;  %388 = vmatpush.xpose.msk.msra.mxu0 %vm22_vm0, %v56_v30 }
  0xb1   :  { %335 = vst.msk [vmem:[%s752_s4 + $0x18] sm:$0xff] %vm22_vm0, %v56_v30  ;;  %405 = vmatpush.xpose.msk.msra.mxu1 %vm22_vm0, %v72_v31 }
  0xb2   :  { %351 = vst.msk [vmem:[%s752_s4 + $0x98] sm:$0xff] %vm22_vm0, %v72_v31 }
  0xb9   :  { %v55_v32 = vld [vmem:[%s751_s2 + $0x10] sm:$0xff] }
  0xba   :  { %v71_v33 = vld [vmem:[%s751_s2 + $0x90] sm:$0xff]  ;;  %389 = vmatpush.xpose.msk.msra.mxu0 %vm22_vm0, %v55_v32 }
  0xbb   :  { %334 = vst.msk [vmem:[%s752_s4 + $0x10] sm:$0xff] %vm22_vm0, %v55_v32  ;;  %406 = vmatpush.xpose.msk.msra.mxu1 %vm22_vm0, %v71_v33 }
  0xbc   :  { %350 = vst.msk [vmem:[%s752_s4 + $0x90] sm:$0xff] %vm22_vm0, %v71_v33 }
  0xc3   :  { %v54_v34 = vld [vmem:[%s751_s2 + $0x8] sm:$0xff]  ;;  %v53_v36 = vld [vmem:[%s751_s2] sm:$0xff] }
  0xc4   :  { %v70_v35 = vld [vmem:[%s751_s2 + $0x88] sm:$0xff]  ;;  %390 = vmatpush.xpose.msk.msra.mxu0 %vm22_vm0, %v54_v34 }
  0xc5   :  { %333 = vst.msk [vmem:[%s752_s4 + $0x8] sm:$0xff] %vm22_vm0, %v54_v34  ;;  %407 = vmatpush.xpose.msk.msra.mxu1 %vm22_vm0, %v70_v35 }
  0xc8   :  { %391 = vmatpush.xpose.msk.msra.mxu0 %vm22_vm0, %v53_v36 }
  0xcb   :  { %392 = vmatmul.msk.f32.vlgmr.msra.gmra.mxu0 %vm22_vm0, %v51_v57 }
  0xcc   :  { %v69_v37 = vld [vmem:[%s751_s2 + $0x80] sm:$0xff] }
  0xcd   :  { %349 = vst.msk [vmem:[%s752_s4 + $0x88] sm:$0xff] %vm22_vm0, %v70_v35  ;;  %408 = vmatpush.xpose.msk.msra.mxu1 %vm22_vm0, %v69_v37 }
  0xce   :  { %332 = vst.msk [vmem:[%s752_s4] sm:$0xff] %vm22_vm0, %v53_v36 }
  0xcf   :  { %348 = vst.msk [vmem:[%s752_s4 + $0x80] sm:$0xff] %vm22_vm0, %v69_v37 }
  0xd0   :  { %366 = vst.msk [vmem:[%s364_s15 - $0x4] sm:$0xf0] %vm365_vm4, %v52_v52  ;;  %409 = vmatmul.msk.f32.vlgmr.msra.gmra.mxu1 %vm22_vm0, %v51_v57  ;;  %vm257_vm0 = vmor %vm253_vm14, %vm256_vm15 }
  0xd1   :  { %vm320_vm4 = vmand %vm314_vm2, %vm318_vm3 }
 0x11a   :  { %v244_v3 = vpop.f32.mrf.mxu2 }
 0x11b   :  { %v258_v4 = vsel %vm257_vm0, %v244_v3, 0.0 }
 0x11c   :  { %416 = vmatmul.msk.f32.vlgmr.msra.gmra.mxu3 %vm270_vm1, %v258_v4 }
 0x124   :  { %418 = vmatmul.msk.f32.vlgmr.msrb.gmra.mxu3 %vm270_vm1, %v258_v4 }
 0x148   :  { %v201_v6 = vpop.f32.mrf.mxu0 }
 0x14d   :  { %v221_v11 = vpop.f32.mrf.mxu1 }
 0x19f   :  { %v291_v7 = vpop.f32.mrf.mxu3 }
 0x1a0   :  { %v322_v8 = vsel %vm320_vm4, %v291_v7, %v201_v6 }
 0x1a1   :  { %v419_v9 = vclamps-f32 %v322_v8, 1.0 }
 0x1a3   :  { %v328_v10 = vmul.f32 30.0, %v419_v9 }
 0x1a5   :  { %330 = vst [vmem:[%s754_s3] sm:$0xff] %v328_v10 }
 0x1a7   :  { %v311_v12 = vpop.f32.mrf.mxu3 }
 0x1a8   :  { %v323_v13 = vsel %vm321_vm7, %v311_v12, %v221_v11 }
 0x1a9   :  { %v420_v14 = vclamps-f32 %v323_v13, 1.0 }
 0x1ab   :  { %v329_v15 = vmul.f32 30.0, %v420_v14 }
 0x1ad   :  { %331 = vst [vmem:[%s754_s3 + $0x8] sm:$0xff] %v329_v15 }

</bundles_post_ra>
